<compile_context>
chip_gen: v7x
topology: tpu7x:2x2x1
jax: 0.10.0
libtpu: 0.0.40
codegen_flags: <defaults>
</compile_context>

<pallas_src>
import functools

import jax
import jax.numpy as jnp
import numpy as np
from jax.experimental import pallas as pl
from jax.experimental.pallas import tpu as pltpu

TRANS_DIM = 3
ROT_DIM = 4
FEAT = TRANS_DIM + ROT_DIM   # 7
LANE = 128                   # TPU vreg lane width
MAX_TB = 2048                # max lanes (batch elements) per grid step


def _round_up(x, m):
    return ((x + m - 1) // m) * m


def _fold_lanes(x):
    """(1, TB) -> (1, LANE) lane-wise partial sums using only whole-vreg VALU adds."""
    tb = x.shape[1]
    acc = x[:, 0:LANE]
    for c in range(1, tb // LANE):
        acc = acc + x[:, c * LANE:(c + 1) * LANE]
    return acc


def _row_losses(yp, yt, p):
    """yp/yt: (FEAT, TB). Returns (t_loss, r_loss), each (1, TB) float32."""
    d = jnp.abs(yp.astype(jnp.float32) - yt.astype(jnp.float32))
    if p == 1:
        v = d
    elif p == 2:
        v = d * d
    else:
        v = d ** p   # static int exponent -> repeated multiplies (no EUP pow chain)
    # Translation lives on sublane rows 0..2, rotation on rows 3..6 -> plain adds.
    t_sum = v[0:1, :] + v[1:2, :] + v[2:3, :]
    r_sum = v[3:4, :] + v[4:5, :] + v[5:6, :] + v[6:7, :]
    if p == 1:
        return t_sum, r_sum
    if p == 2:
        return jnp.sqrt(t_sum), jnp.sqrt(r_sum)
    inv_p = jnp.float32(1.0 / p)
    # exp(log(x)/p); x == 0 guarded, nan/inf still propagate via x * 0.
    t_l = jnp.where(t_sum > 0, jnp.exp(jnp.log(t_sum) * inv_p), t_sum * 0.0)
    r_l = jnp.where(r_sum > 0, jnp.exp(jnp.log(r_sum) * inv_p), r_sum * 0.0)
    return t_l, r_l


def _mean_kernel(yp_ref, yt_ref, part_ref, *, p):
    """part_ref block: (1, 2, LANE) lane-folded partial sums for this batch tile."""
    t_l, r_l = _row_losses(yp_ref[...], yt_ref[...], p)
    t_part = _fold_lanes(t_l)
    r_part = _fold_lanes(r_l)
    part_ref[...] = jnp.concatenate([t_part, r_part], axis=0)[None, :, :]


def _none_kernel(yp_ref, yt_ref, tr_ref, bad_ref, *, p):
    """tr_ref block: (2, TB) per-row losses; bad_ref: (1, 2, LANE) non-finite counts."""
    t_l, r_l = _row_losses(yp_ref[...], yt_ref[...], p)
    tr_ref[...] = jnp.concatenate([t_l, r_l], axis=0)
    bad_t = _fold_lanes(jnp.where(jnp.isfinite(t_l), 0.0, 1.0))
    bad_r = _fold_lanes(jnp.where(jnp.isfinite(r_l), 0.0, 1.0))
    bad_ref[...] = jnp.concatenate([bad_t, bad_r], axis=0)[None, :, :]


def _padded_layout(y_pred, y):
    """Transpose to (FEAT, B) and zero-pad batch to a multiple of the lane tile."""
    b, _ = y_pred.shape
    b_lane = _round_up(b, LANE)
    tb = b_lane if b_lane <= MAX_TB else MAX_TB
    b_pad = _round_up(b, tb)
    grid = b_pad // tb
    ypt = jnp.pad(jnp.transpose(y_pred, (1, 0)), ((0, 0), (0, b_pad - b)))
    ytt = jnp.pad(jnp.transpose(y, (1, 0)), ((0, 0), (0, b_pad - b)))
    return ypt, ytt, tb, grid, b_pad


@functools.partial(jax.jit, static_argnames=("p",))
def _mean_device(y_pred, y, *, p):
    b = y_pred.shape[0]
    ypt, ytt, tb, grid, _ = _padded_layout(y_pred, y)
    part = pl.pallas_call(
        functools.partial(_mean_kernel, p=p),
        out_shape=jax.ShapeDtypeStruct((grid, 2, LANE), jnp.float32),
        grid=(grid,),
        in_specs=[pl.BlockSpec((FEAT, tb), lambda i: (0, i)),
                  pl.BlockSpec((FEAT, tb), lambda i: (0, i))],
        out_specs=pl.BlockSpec((1, 2, LANE), lambda i: (i, 0, 0)),
        compiler_params=pltpu.CompilerParams(
            dimension_semantics=("parallel",)),
    )(ypt, ytt)
    # Padded lanes contribute exactly 0; divide by the real batch size.
    return jnp.sum(part, axis=(0, 2)) / jnp.float32(b)    # (2,)


@functools.partial(jax.jit, static_argnames=("p",))
def _none_device(y_pred, y, *, p):
    b = y_pred.shape[0]
    ypt, ytt, tb, grid, b_pad = _padded_layout(y_pred, y)
    tr_t, bad = pl.pallas_call(
        functools.partial(_none_kernel, p=p),
        out_shape=(jax.ShapeDtypeStruct((2, b_pad), jnp.float32),
                   jax.ShapeDtypeStruct((grid, 2, LANE), jnp.float32)),
        grid=(grid,),
        in_specs=[pl.BlockSpec((FEAT, tb), lambda i: (0, i)),
                  pl.BlockSpec((FEAT, tb), lambda i: (0, i))],
        out_specs=(pl.BlockSpec((2, tb), lambda i: (0, i)),
                   pl.BlockSpec((1, 2, LANE), lambda i: (i, 0, 0))),
        compiler_params=pltpu.CompilerParams(
            dimension_semantics=("parallel",)),
    )(ypt, ytt)
    tr = jnp.transpose(tr_t[:, :b], (1, 0))               # (B, 2)
    bad_counts = jnp.sum(bad, axis=(0, 2))                 # (2,) non-finite counts
    return tr, bad_counts


def transform_loss_calculation(y_pred, y, *, p=2, reduction="mean",
                               check_finite=True):
    """Pallas implementation of TransformLossCalculation.forward."""
    assert y_pred.shape == y.shape
    assert y_pred.ndim == 2 and y_pred.shape[1] == FEAT, \
        f"expected (B, {FEAT}) inputs, got {y_pred.shape}"

    if reduction == "mean":
        mean = _mean_device(y_pred, y, p=p)
        if check_finite:
            # TODO(synk): raising RuntimeError requires concrete values; this is the
            # single (8-byte) device->host read of the whole path.
            m = np.asarray(jax.device_get(mean))
            if not np.isfinite(m[0]):
                raise RuntimeError(
                    "TransformLoss: translation loss is nan or inf:\n"
                    "y_pred = \n{}\ny = \n{}".format(y_pred, y))
            if not np.isfinite(m[1]):
                raise RuntimeError(
                    "TransformLoss: rotation loss is nan or inf:\n"
                    "y_pred = \n{}\ny = \n{}".format(y_pred, y))
        return mean[0], mean[1]

    tr, bad_counts = _none_device(y_pred, y, p=p)
    if check_finite:
        bc = np.asarray(jax.device_get(bad_counts))        # single tiny host read
        if bc[0] > 0:
            raise RuntimeError(
                "TransformLoss: translation loss is nan or inf:\n"
                "y_pred = \n{}\ny = \n{}".format(y_pred, y))
        if bc[1] > 0:
            raise RuntimeError(
                "TransformLoss: rotation loss is nan or inf:\n"
                "y_pred = \n{}\ny = \n{}".format(y_pred, y))
    return tr


# ----------------------------- reference / test -----------------------------

def _reference_rows(y_pred, y, p):
    d = jnp.abs(y_pred.astype(jnp.float32) - y.astype(jnp.float32))
    t = jnp.sum(d[:, :TRANS_DIM] ** p, axis=1) ** (1.0 / p)
    r = jnp.sum(d[:, TRANS_DIM:] ** p, axis=1) ** (1.0 / p)
    return jnp.stack([t, r], axis=1)


def _reference_mean(y_pred, y, p):
    return jnp.mean(_reference_rows(y_pred, y, p), axis=0)


def _close(a, b, tol):
    a = float(a)
    b = float(b)
    return abs(a - b) <= tol * (1.0 + abs(b))


if __name__ == "__main__":
    key = jax.random.PRNGKey(0)
    k1, k2, k3, k4, k5, k6 = jax.random.split(key, 6)

    B = 8
    # Deterministic synthetic pose labels: translation + unit quaternion.
    t_pred = jax.random.normal(k1, (B, TRANS_DIM), dtype=jnp.float32)
    t_true = jax.random.normal(k2, (B, TRANS_DIM), dtype=jnp.float32)
    q_pred = jax.random.normal(k3, (B, ROT_DIM), dtype=jnp.float32)
    q_true = jax.random.normal(k4, (B, ROT_DIM), dtype=jnp.float32)
    q_pred = q_pred / jnp.linalg.norm(q_pred, axis=1, keepdims=True)
    q_true = q_true / jnp.linalg.norm(q_true, axis=1, keepdims=True)
    y_pred = jnp.concatenate([t_pred, q_pred], axis=1)   # (B, 7)
    y_true = jnp.concatenate([t_true, q_true], axis=1)   # (B, 7)

    # reduction='mean', p=2
    t_loss, r_loss = transform_loss_calculation(y_pred, y_true, p=2, reduction="mean")
    jax.block_until_ready((t_loss, r_loss))
    ref = _reference_mean(y_pred, y_true, 2)
    assert _close(t_loss, ref[0], 1e-5), (t_loss, ref[0])
    assert _close(r_loss, ref[1], 1e-5), (r_loss, ref[1])

    # reduction='mean', p=1
    t1, r1 = transform_loss_calculation(y_pred, y_true, p=1, reduction="mean")
    jax.block_until_ready((t1, r1))
    ref1 = _reference_mean(y_pred, y_true, 1)
    assert _close(t1, ref1[0], 1e-5), (t1, ref1[0])
    assert _close(r1, ref1[1], 1e-5), (r1, ref1[1])

    # reduction='none', p=2
    tr_none = transform_loss_calculation(y_pred, y_true, p=2, reduction="none")
    jax.block_until_ready(tr_none)
    assert tr_none.shape == (B, 2)
    ref_rows = _reference_rows(y_pred, y_true, 2)
    assert float(jnp.max(jnp.abs(tr_none - ref_rows))) < 1e-5

    # Multi-block grid path (B > MAX_TB, non-multiple of the lane tile).
    B_big = 2 * MAX_TB + 19
    yp_big = jax.random.normal(k5, (B_big, FEAT), dtype=jnp.float32)
    yt_big = jax.random.normal(k6, (B_big, FEAT), dtype=jnp.float32)
    tb_mean = transform_loss_calculation(yp_big, yt_big, p=2, reduction="mean")
    jax.block_until_ready(tb_mean)
    ref_big = _reference_mean(yp_big, yt_big, 2)
    assert _close(tb_mean[0], ref_big[0], 1e-4), (tb_mean[0], ref_big[0])
    assert _close(tb_mean[1], ref_big[1], 1e-4), (tb_mean[1], ref_big[1])

    tr_big = transform_loss_calculation(yp_big, yt_big, p=2, reduction="none")
    jax.block_until_ready(tr_big)
    assert tr_big.shape == (B_big, 2)
    ref_rows_big = _reference_rows(yp_big, yt_big, 2)
    assert float(jnp.max(jnp.abs(tr_big - ref_rows_big))) < 1e-4

    # nan input must raise (mirrors the torch RuntimeError branch).
    y_bad = y_pred.at[0, 0].set(jnp.nan)
    raised = False
    try:
        transform_loss_calculation(y_bad, y_true, p=2, reduction="mean")
    except RuntimeError:
        raised = True
    assert raised, "expected RuntimeError on nan input"

    print("KERNEL_OK")
</pallas_src>

<mosaic_0001>
module attributes {stable_mosaic.version = 11 : i64} {
  func.func @_mean_kernel(%arg0: i32, %arg1: memref<7x128xf32, #tpu.memory_space<vmem>>, %arg2: memref<7x128xf32, #tpu.memory_space<vmem>>, %arg3: memref<1x2x128xf32, #tpu.memory_space<vmem>>) attributes {dimension_semantics = [#tpu.dimension_semantics<parallel>], iteration_bounds = array<i64: 1>, scalar_prefetch = 0 : i64, scratch_operands = 0 : i64, tpu.core_type = #tpu.core_type<tc>, window_params = [{transform_indices = @transform_0, window_bounds = array<i64: 7, 128>}, {transform_indices = @transform_1, window_bounds = array<i64: 7, 128>}, {transform_indices = @transform_2, window_bounds = array<i64: 1, 2, 128>}]} {
    %c0 = arith.constant 0 : index
    %c0_0 = arith.constant 0 : index
    %0 = vector.load %arg1[%c0, %c0_0] : memref<7x128xf32, #tpu.memory_space<vmem>>, vector<7x128xf32>
    %c0_1 = arith.constant 0 : index
    %c0_2 = arith.constant 0 : index
    %1 = vector.load %arg2[%c0_1, %c0_2] : memref<7x128xf32, #tpu.memory_space<vmem>>, vector<7x128xf32>
    %2 = arith.subf %0, %1 : vector<7x128xf32>
    %3 = math.absf %2 : vector<7x128xf32>
    %4 = arith.mulf %3, %3 : vector<7x128xf32>
    %5 = vector.extract_strided_slice %4 {offsets = [0, 0], sizes = [1, 128], strides = [1, 1]} : vector<7x128xf32> to vector<1x128xf32>
    %6 = vector.extract_strided_slice %4 {offsets = [1, 0], sizes = [1, 128], strides = [1, 1]} : vector<7x128xf32> to vector<1x128xf32>
    %7 = arith.addf %5, %6 : vector<1x128xf32>
    %8 = vector.extract_strided_slice %4 {offsets = [2, 0], sizes = [1, 128], strides = [1, 1]} : vector<7x128xf32> to vector<1x128xf32>
    %9 = arith.addf %7, %8 : vector<1x128xf32>
    %10 = vector.extract_strided_slice %4 {offsets = [3, 0], sizes = [1, 128], strides = [1, 1]} : vector<7x128xf32> to vector<1x128xf32>
    %11 = vector.extract_strided_slice %4 {offsets = [4, 0], sizes = [1, 128], strides = [1, 1]} : vector<7x128xf32> to vector<1x128xf32>
    %12 = arith.addf %10, %11 : vector<1x128xf32>
    %13 = vector.extract_strided_slice %4 {offsets = [5, 0], sizes = [1, 128], strides = [1, 1]} : vector<7x128xf32> to vector<1x128xf32>
    %14 = arith.addf %12, %13 : vector<1x128xf32>
    %15 = vector.extract_strided_slice %4 {offsets = [6, 0], sizes = [1, 128], strides = [1, 1]} : vector<7x128xf32> to vector<1x128xf32>
    %16 = arith.addf %14, %15 : vector<1x128xf32>
    %17 = math.sqrt %9 : vector<1x128xf32>
    %18 = math.sqrt %16 : vector<1x128xf32>
    %19 = tpu.concatenate %17, %18 in 0 : vector<1x128xf32>, vector<1x128xf32> -> vector<2x128xf32>
    %20 = vector.shape_cast %19 : vector<2x128xf32> to vector<1x2x128xf32>
    %c0_3 = arith.constant 0 : index
    %c0_4 = arith.constant 0 : index
    %c0_5 = arith.constant 0 : index
    %21 = vector.load %arg3[%c0_3, %c0_4, %c0_5] : memref<1x2x128xf32, #tpu.memory_space<vmem>>, vector<1x2x128xf32>
    tpu.vector_store %arg3[%c0_3, %c0_4, %c0_5], %20 {strides = array<i32>} : memref<1x2x128xf32, #tpu.memory_space<vmem>>, vector<1x2x128xf32>,
    return
  }
  func.func @transform_0(%arg0: i32) -> (i32, i32) {
    %c0_i32 = arith.constant 0 : i32
    %c0_i32_0 = arith.constant 0 : i32
    return %c0_i32, %arg0 : i32, i32
  }
  func.func @transform_1(%arg0: i32) -> (i32, i32) {
    %c0_i32 = arith.constant 0 : i32
    %c0_i32_0 = arith.constant 0 : i32
    return %c0_i32, %arg0 : i32, i32
  }
  func.func @transform_2(%arg0: i32) -> (i32, i32, i32) {
    %c0_i32 = arith.constant 0 : i32
    %c0_i32_0 = arith.constant 0 : i32
    %c0_i32_1 = arith.constant 0 : i32
    return %arg0, %c0_i32, %c0_i32_0 : i32, i32, i32
  }
}

</mosaic_0001>

<bundles_post_ra>
// kernel: _mean_device.1
= control target key start
LH: loop header
LB: loop body
LE: loop exit
PB: predicated region body
PF: predicated region fallthrough
CT: control target
= control target key end

     0   :  { %vm43_vm4 = vcmask 1040384   ;;  %s78_s0 = inlined_call_operand.vmem [shape: f32[7,128], index: 0, kind: input, shape index: {}]   ;;  %s79_s1 = inlined_call_operand.vmem [shape: f32[7,128], index: 1, kind: input, shape index: {}]   ;;  %s80_s2 = inlined_call_operand.vmem [shape: f32[1,2,128], index: 2, kind: output, shape index: {}]  }
   0x1   :  { %v11_v0 = vld [vmem:[%s78_s0] sm:$0x7f] }
   0x2   :  { %v12_v1 = vld [vmem:[%s79_s1] sm:$0x7f] }
   0x3   :  { %v13_v2 = vsub.f32 %v11_v0, %v12_v1 }
   0x5   :  { %v14_v3 = vand.u32 2147483647, %v13_v2 }
   0x7   :  { %v15_v4 = vmul.f32 %v14_v3, %v14_v3 }
   0x9   :  { %v17_v5 = vrot.slane %v15_v4, 1  ;;  %v20_v6 = vrot.slane %v15_v4, 2  ;;  %v23_v8 = vrot.slane %v15_v4, 3 }
   0xb   :  { %v19_v7 = vadd.f32 %v17_v5, %v15_v4 }
   0xd   :  { %v22_v9 = vadd.f32 %v20_v6, %v19_v7 }
   0xf   :  { %v25_v10 = vadd.f32 %v23_v8, %v22_v9  ;;  %50 = vrsqrt.f32 %v22_v9  ;;  %vm28_vm0 = vcmp.eq.f32.partialorder %v22_v9, inf  ;;  %v31_v14 = vand.u32 2147483648, %v22_v9 }
  0x10   :  { %vm30_vm2 = vcmp.eq.f32.partialorder %v22_v9, 0.0 }
  0x11   :  { %52 = vrsqrt.f32 %v25_v10  ;;  %vm35_vm1 = vcmp.eq.f32.partialorder %v25_v10, inf  ;;  %v38_v15 = vand.u32 2147483648, %v25_v10  ;;  %vm37_vm3 = vcmp.eq.f32.partialorder %v25_v10, 0.0 }
  0x19   :  { %v51_v11 = vpop.eup %50 }
  0x1a   :  { %v27_v12 = vmul.f32 %v51_v11, %v22_v9 }
  0x1b   :  { %v53_v13 = vpop.eup %52 }
  0x1c   :  { %v29_v16 = vsel %vm28_vm0, %v22_v9, %v27_v12  ;;  %v34_v17 = vmul.f32 %v53_v13, %v25_v10 }
  0x1d   :  { %v32_v19 = vsel %vm30_vm2, %v31_v14, %v29_v16 }
  0x1e   :  { %v36_v18 = vsel %vm35_vm1, %v25_v10, %v34_v17 }
  0x1f   :  { %v39_v20 = vsel %vm37_vm3, %v38_v15, %v36_v18 }
  0x20   :  { %v41_v21 = vrot.slane %v39_v20, 2 }
  0x22   :  { %v44_v22 = vsel %vm43_vm4, %v32_v19, %v41_v21 }
  0x23   :  { %45 = vst [vmem:[%s80_s2] sm:$0x3] %v44_v22 }

</bundles_post_ra>
